<compile_context>
chip_gen: v7x
topology: tpu7x:2x2x1
jax: 0.10.0
libtpu: 0.0.40
codegen_flags: <defaults>
</compile_context>

<pallas_src>
import functools
import math

import numpy as np
import jax
import jax.numpy as jnp
from jax import lax
from jax.experimental import pallas as pl
from jax.experimental.pallas import tpu as pltpu


# --------------------------- kernel 1: value projection ----------------------

def _value_proj_kernel(x_ref, wv_ref, bv_ref, v_ref):
    # (TL, C) @ (C, C) + (1, C), f32 accumulation on the MXU.
    v_ref[0] = (jnp.dot(x_ref[0], wv_ref[...],
                        preferred_element_type=jnp.float32) + bv_ref[...])


# --------------------------- kernel 2: deformable sampling -------------------

def _msdeform_kernel(*refs, spatial_shapes, n_heads, n_points, d_head,
                     offset_dim, act_name, act_scale, act_bias, aux_width):
    L = len(spatial_shapes)
    H, K, Dh, Doff = n_heads, n_points, d_head, offset_dim
    M = H * L * K
    LK = L * K

    q_ref, rx_ref, ry_ref, we_ref, wp_ref = refs[:5]
    v_refs = refs[5:5 + L]
    wo_ref, bo_ref, out_ref, aux_ref, samp_ref = refs[5 + L:]

    TQ = q_ref.shape[1]
    C = q_ref.shape[2]

    # ---- offset / attention-logit head (f32) ----
    q = q_ref[0]
    e = jnp.dot(q, we_ref[...], preferred_element_type=jnp.float32)   # (TQ, Doff*M)
    if act_name == 'star_relu':
        r = jnp.maximum(e, 0.0)
        e = act_scale * r * r + act_bias
    elif act_name == 'silu':
        e = e * jax.nn.sigmoid(e)
    # else: identity ('none')

    # Per-(h,l,p) Doff->1 projections as broadcast FMAs on the d-major slabs
    # (1/W_l, 1/H_l and the x/y biases were pre-folded on the host).
    ox = jnp.zeros((TQ, M), jnp.float32)
    oy = jnp.zeros((TQ, M), jnp.float32)
    al = jnp.zeros((TQ, M), jnp.float32)
    for d in range(Doff):
        ed = e[:, d * M:(d + 1) * M]
        ox = ox + ed * wp_ref[d:d + 1, :]
        oy = oy + ed * wp_ref[Doff + d:Doff + d + 1, :]
        al = al + ed * wp_ref[2 * Doff + d:2 * Doff + d + 1, :]
    al = al + wp_ref[3 * Doff:3 * Doff + 1, :]

    locx = rx_ref[0] + ox
    locy = ry_ref[0] + oy

    # ---- packed lane-dense aux output: [ locx | locy | attn | zero pad ] ----
    aux_ref[0] = jnp.zeros((TQ, aux_width), jnp.float32)
    aux_ref[0, :, 0:M] = locx
    aux_ref[0, :, M:2 * M] = locy

    # ---- per-head softmax over the (L*K) group (EUP exp + approx reciprocal) ----
    attn_heads = []
    for h in range(H):
        logits = al[:, h * LK:(h + 1) * LK]
        mx = jnp.max(logits, axis=-1, keepdims=True)
        p = jnp.exp(logits - mx)
        denom = jnp.sum(p, axis=-1, keepdims=True)
        attn_h = p * pl.reciprocal(denom, approx=True)
        attn_heads.append(attn_h)
        aux_ref[0, :, 2 * M + h * LK:2 * M + (h + 1) * LK] = attn_h

    # ---- factorized bilinear sampling, level-outer / head-inner ----
    head_accs = [jnp.zeros((TQ, Dh), jnp.float32) for _ in range(H)]
    for l in range(L):
        Hl, Wl = spatial_shapes[l]
        WD = Wl * Dh
        # Hoisted per-level constants (built once per level, reused by all heads/points).
        yg = lax.broadcasted_iota(jnp.int32, (TQ, Hl), 1)               # y grid
        xgw = lax.broadcasted_iota(jnp.int32, (TQ, WD), 1) // Dh        # x grid, Dh-wide
        jrow = lax.broadcasted_iota(jnp.int32, (WD, Dh), 0)
        dcol = lax.broadcasted_iota(jnp.int32, (WD, Dh), 1)
        sel = jnp.where(jrow % Dh == dcol, 1.0, 0.0)                    # (WD, Dh) 0/1
        for h in range(H):
            vh = v_refs[l][0, h]                                        # (Hl, Wl*Dh)
            attn_h = attn_heads[h]
            for k in range(K):
                col = (h * L + l) * K + k
                x = locx[:, col:col + 1] * Wl - 0.5
                y = locy[:, col:col + 1] * Hl - 0.5
                a = attn_h[:, l * K + k:l * K + k + 1]
                x0 = jnp.floor(x)
                y0 = jnp.floor(y)
                fx = x - x0
                fy = y - y0
                x0i = x0.astype(jnp.int32)
                y0i = y0.astype(jnp.int32)
                # Out-of-range taps never match the iota grids -> grid_sample's
                # zero padding.  Attention weight folded into the narrow y factor.
                ry = a * (jnp.where(yg == y0i, 1.0 - fy, 0.0)
                          + jnp.where(yg == y0i + 1, fy, 0.0))          # (TQ, Hl)
                rxw = (jnp.where(xgw == x0i, 1.0 - fx, 0.0)
                       + jnp.where(xgw == x0i + 1, fx, 0.0))            # (TQ, Wl*Dh)
                # Hl-deep contraction on the MXU, then x-reduction via 0/1 matmul.
                t = jnp.dot(ry, vh, preferred_element_type=jnp.float32)     # (TQ, Wl*Dh)
                head_accs[h] = head_accs[h] + jnp.dot(
                    t * rxw, sel, preferred_element_type=jnp.float32)       # (TQ, Dh)

    # ---- heads -> lane slices of one accumulator; single C-deep output proj ----
    for h in range(H):
        samp_ref[:, h * Dh:(h + 1) * Dh] = head_accs[h]
    out_ref[0] = (jnp.dot(samp_ref[...], wo_ref[...],
                          preferred_element_type=jnp.float32) + bo_ref[...])


# ------------------------------ forward glue ---------------------------------

def msdeform_onoffset_forward(params, query, reference_points, input_flatten,
                              spatial_shapes_static, cfg):
    N, Lq, C = query.shape
    _, Len_in, _ = input_flatten.shape
    H, L, K, Doff = cfg['n_heads'], cfg['n_levels'], cfg['enc_n_points'], cfg['offset_dim']
    Dh = C // H
    M = H * L * K

    level_start = [0]
    for (hl, wl) in spatial_shapes_static[:-1]:
        level_start.append(level_start[-1] + hl * wl)

    # query tiling (single tile for small Lq; raise toward 256-512 on v5e/v6e)
    TQ = Lq if Lq <= 128 else 128
    assert Lq % TQ == 0, "Lq must be divisible by the query tile"
    T = Lq // TQ

    # Len_in tiling for the value projection kernel
    TL = Len_in if Len_in <= 512 else 512
    assert Len_in % TL == 0, "Len_in must be divisible by the value tile"
    NL = Len_in // TL

    AUXW = ((3 * M + 127) // 128) * 128     # lane-dense packed aux width

    # ---- host-side parameter repacking (pure layout, no kernel compute) ----
    level_of_col = (np.arange(M) // K) % L
    wl_col = np.asarray([spatial_shapes_static[l][1] for l in level_of_col], np.float32)
    hl_col = np.asarray([spatial_shapes_static[l][0] for l in level_of_col], np.float32)

    Wsoff = params['sampling_offsets_weight'].reshape(M, Doff, 2)
    Wattn = params['attention_weights_weight'].reshape(M, Doff)
    wx = Wsoff[:, :, 0].T / wl_col[None, :]          # (Doff, M) with 1/W_l folded
    wy = Wsoff[:, :, 1].T / hl_col[None, :]          # (Doff, M) with 1/H_l folded
    wa = Wattn.T                                     # (Doff, M)
    ba = params['attention_weights_bias'].reshape(1, M)
    wpack = jnp.concatenate([wx, wy, wa, ba], axis=0).astype(jnp.float32)  # (3*Doff+1, M)

    sob = params['sampling_offsets_bias'].reshape(M, 2)
    refx = (reference_points[..., 0][:, :, level_of_col]
            + (sob[:, 0] / wl_col).reshape(1, 1, M)).astype(jnp.float32)
    refy = (reference_points[..., 1][:, :, level_of_col]
            + (sob[:, 1] / hl_col).reshape(1, 1, M)).astype(jnp.float32)

    # (m, d) -> (d, m) column permutation so Doff->1 projections become broadcast FMAs
    we_perm = (params['offset_embeds_w'].reshape(C, M, Doff)
               .transpose(0, 2, 1).reshape(C, M * Doff)).astype(jnp.float32)

    wv = params['value_proj_w'].astype(jnp.float32)
    bv = params['value_proj_b'].reshape(1, C).astype(jnp.float32)
    wo = params['output_proj_w'].astype(jnp.float32)
    bo = params['output_proj_b'].reshape(1, C).astype(jnp.float32)

    # ---- kernel 1: value projection, streamed over (batch, Len_in tiles) ----
    value = pl.pallas_call(
        _value_proj_kernel,
        grid=(N, NL),
        in_specs=[pl.BlockSpec((1, TL, C), lambda n, j: (n, j, 0)),
                  pl.BlockSpec((C, C), lambda n, j: (0, 0)),
                  pl.BlockSpec((1, C), lambda n, j: (0, 0))],
        out_specs=pl.BlockSpec((1, TL, C), lambda n, j: (n, j, 0)),
        out_shape=jax.ShapeDtypeStruct((N, Len_in, C), jnp.float32),
        compiler_params=pltpu.CompilerParams(
            dimension_semantics=("parallel", "parallel")),
    )(input_flatten.astype(jnp.float32), wv, bv)

    # Host-side layout plumbing: per-level, head-major, y-major value slabs
    # (N, H, Hl, Wl*Dh) so the sampling kernel never reshapes / sub-lane-slices value.
    v_lvls = []
    start = 0
    for (Hl, Wl) in spatial_shapes_static:
        sz = Hl * Wl
        sl = value[:, start:start + sz, :].reshape(N, Hl, Wl, H, Dh)
        v_lvls.append(jnp.transpose(sl, (0, 3, 1, 2, 4)).reshape(N, H, Hl, Wl * Dh))
        start += sz

    kernel = functools.partial(
        _msdeform_kernel,
        spatial_shapes=tuple((int(a), int(b)) for a, b in spatial_shapes_static),
        n_heads=H, n_points=K, d_head=Dh, offset_dim=Doff,
        act_name=cfg['offset_act_name'],
        act_scale=float(params['act_scale']), act_bias=float(params['act_bias']),
        aux_width=AUXW)

    blk_q = pl.BlockSpec((1, TQ, C), lambda n, t: (n, t, 0))
    blk_m = pl.BlockSpec((1, TQ, M), lambda n, t: (n, t, 0))
    v_specs = [pl.BlockSpec((1, H, Hl, Wl * Dh), lambda n, t: (n, 0, 0, 0))
               for (Hl, Wl) in spatial_shapes_static]

    samp_mm_flops = 0
    for (Hl, Wl) in spatial_shapes_static:
        samp_mm_flops += 2 * Hl * Wl * Dh + 2 * Wl * Dh * Dh
    flops = int(N * Lq * (2 * C * M * Doff + 2 * C * C)
                + N * Lq * H * K * samp_mm_flops
                + N * 2 * Len_in * C * C)
    bytes_accessed = int(4 * (query.size + refx.size + refy.size
                              + N * Len_in * C + N * Lq * (C + AUXW)
                              + we_perm.size + wpack.size + wo.size + bo.size))

    out, aux = pl.pallas_call(
        kernel,
        grid=(N, T),
        in_specs=[blk_q, blk_m, blk_m,
                  pl.BlockSpec((C, M * Doff), lambda n, t: (0, 0)),
                  pl.BlockSpec((3 * Doff + 1, M), lambda n, t: (0, 0))]
                 + v_specs
                 + [pl.BlockSpec((C, C), lambda n, t: (0, 0)),
                    pl.BlockSpec((1, C), lambda n, t: (0, 0))],
        out_specs=(blk_q,
                   pl.BlockSpec((1, TQ, AUXW), lambda n, t: (n, t, 0))),
        out_shape=(jax.ShapeDtypeStruct((N, Lq, C), jnp.float32),
                   jax.ShapeDtypeStruct((N, Lq, AUXW), jnp.float32)),
        scratch_shapes=[pltpu.VMEM((TQ, C), jnp.float32)],
        compiler_params=pltpu.CompilerParams(
            dimension_semantics=("parallel", "parallel")),
        cost_estimate=pl.CostEstimate(flops=flops,
                                      transcendentals=int(N * Lq * M),
                                      bytes_accessed=bytes_accessed),
    )(query.astype(jnp.float32), refx, refy, we_perm, wpack, *v_lvls, wo, bo)

    locx = aux[:, :, 0:M]
    locy = aux[:, :, M:2 * M]
    attn = aux[:, :, 2 * M:3 * M]
    sampling_locations = jnp.stack(
        [locx.reshape(N, Lq, H, L, K), locy.reshape(N, Lq, H, L, K)], axis=-1)
    attention_weights = attn.reshape(N, Lq, H, L, K)
    return out, sampling_locations, attention_weights


# ----------------------- deterministic parameter init -----------------------

def init_params(key, cfg):
    C, H, L, K, Doff = (cfg['d_model'], cfg['n_heads'], cfg['n_levels'],
                        cfg['enc_n_points'], cfg['offset_dim'])
    ks = jax.random.split(key, 8)

    def xavier(k, fan_in, fan_out):
        lim = math.sqrt(6.0 / (fan_in + fan_out))
        return jax.random.uniform(k, (fan_in, fan_out), jnp.float32, -lim, lim)

    # deformable-DETR style deterministic bias init (same as module._reset_parameters)
    thetas = jnp.arange(H, dtype=jnp.float32) * (2.0 * math.pi / H)
    grid = jnp.stack([jnp.cos(thetas), jnp.sin(thetas)], -1)
    grid = grid / jnp.max(jnp.abs(grid), axis=-1, keepdims=True)
    grid = jnp.tile(grid.reshape(H, 1, 1, 2), (1, L, K, 1))
    grid = grid * jnp.arange(1, K + 1, dtype=jnp.float32).reshape(1, 1, K, 1)

    return dict(
        offset_embeds_w=0.2 * jax.random.normal(ks[0], (C, H * L * K * Doff), jnp.float32),
        sampling_offsets_weight=0.2 * jax.random.normal(ks[1], (H, L, K, Doff, 2), jnp.float32),
        sampling_offsets_bias=grid,
        attention_weights_weight=0.2 * jax.random.normal(ks[2], (H, L, K, Doff, 1), jnp.float32),
        attention_weights_bias=0.1 * jax.random.normal(ks[3], (H, L, K), jnp.float32),
        value_proj_w=xavier(ks[4], C, C),
        value_proj_b=jnp.zeros((C,), jnp.float32),
        output_proj_w=xavier(ks[5], C, C),
        output_proj_b=jnp.zeros((C,), jnp.float32),
        act_scale=1.0,   # StarReLU scale
        act_bias=0.0,    # StarReLU bias
    )


# ------------------------- plain-JAX reference check ------------------------

def reference_forward(params, query, reference_points, input_flatten,
                      spatial_shapes_static, cfg):
    N, Lq, C = query.shape
    _, Len_in, _ = input_flatten.shape
    H, L, K, Doff = cfg['n_heads'], cfg['n_levels'], cfg['enc_n_points'], cfg['offset_dim']
    Dh = C // H
    hp = lax.Precision.HIGHEST

    value = jnp.dot(input_flatten, params['value_proj_w'], precision=hp) + params['value_proj_b']
    e = jnp.dot(query, params['offset_embeds_w'], precision=hp)
    if cfg['offset_act_name'] == 'star_relu':
        e = float(params['act_scale']) * jnp.maximum(e, 0.0) ** 2 + float(params['act_bias'])
    elif cfg['offset_act_name'] == 'silu':
        e = e * jax.nn.sigmoid(e)
    e6 = e.reshape(N, Lq, H, L, K, Doff)
    soff = jnp.einsum('nqhlkd,hlkdc->nqhlkc', e6, params['sampling_offsets_weight'],
                      precision=hp) + params['sampling_offsets_bias']
    alog = jnp.einsum('nqhlkd,hlkd->nqhlk', e6, params['attention_weights_weight'][..., 0],
                      precision=hp) + params['attention_weights_bias']
    attn = jax.nn.softmax(alog.reshape(N, Lq, H, L * K), -1).reshape(N, Lq, H, L, K)
    normalizer = jnp.asarray([[w, h] for (h, w) in spatial_shapes_static], jnp.float32)
    loc = reference_points[:, :, None, :, None, :] + soff / normalizer[None, None, None, :, None, :]

    value_hd = value.reshape(N, Len_in, H, Dh)
    out = jnp.zeros((N, Lq, H, Dh), jnp.float32)
    start = 0
    bidx = jnp.arange(N)[:, None, None, None]
    hidx = jnp.arange(H)[None, None, :, None]
    for l, (Hl, Wl) in enumerate(spatial_shapes_static):
        v_l = value_hd[:, start:start + Hl * Wl]
        x = loc[:, :, :, l, :, 0] * Wl - 0.5
        y = loc[:, :, :, l, :, 1] * Hl - 0.5
        x0 = jnp.floor(x); y0 = jnp.floor(y)
        fx = x - x0; fy = y - y0
        x0i = x0.astype(jnp.int32); y0i = y0.astype(jnp.int32)
        for dy, dx, w in [(0, 0, (1 - fy) * (1 - fx)), (0, 1, (1 - fy) * fx),
                          (1, 0, fy * (1 - fx)), (1, 1, fy * fx)]:
            cx = x0i + dx; cy = y0i + dy
            inb = ((cx >= 0) & (cx < Wl) & (cy >= 0) & (cy < Hl)).astype(jnp.float32)
            idx = jnp.clip(cy, 0, Hl - 1) * Wl + jnp.clip(cx, 0, Wl - 1)
            g = v_l[bidx, idx, hidx, :]                                 # (N, Lq, H, K, Dh)
            out = out + jnp.sum((w * inb * attn[:, :, :, l, :])[..., None] * g, axis=3)
        start += Hl * Wl
    ms_out = out.reshape(N, Lq, C)
    output = jnp.dot(ms_out, params['output_proj_w'], precision=hp) + params['output_proj_b']
    return output, loc, attn


# ---------------------------------- main -------------------------------------

if __name__ == "__main__":
    cfg = dict(d_model=32, n_levels=2, n_heads=4, enc_n_points=2, offset_dim=4,
               offset_act_name='star_relu', d_state=16, dt_rank='auto',
               d_conv=1, d_conv_bias=True, use_Dskip=False)
    # static spatial pyramid (H_l, W_l); the kernels specialize on these shapes.
    spatial_shapes_static = [(8, 8), (4, 4)]
    N, Lq = 2, 16
    Len_in = sum(h * w for h, w in spatial_shapes_static)

    key = jax.random.PRNGKey(0)
    kq, kf, kr, kp = jax.random.split(key, 4)
    query = jax.random.normal(kq, (N, Lq, cfg['d_model']), jnp.float32)
    input_flatten = jax.random.normal(kf, (N, Len_in, cfg['d_model']), jnp.float32)
    reference_points = jax.random.uniform(kr, (N, Lq, cfg['n_levels'], 2), jnp.float32)
    # kept only for API fidelity with the torch signature (kernels are shape-specialized)
    input_spatial_shapes = jnp.asarray(spatial_shapes_static, jnp.int32)
    input_level_start_index = jnp.concatenate(
        [jnp.zeros((1,), jnp.int32),
         jnp.cumsum(input_spatial_shapes[:, 0] * input_spatial_shapes[:, 1])[:-1]])

    params = init_params(kp, cfg)

    out, loc, attn = msdeform_onoffset_forward(params, query, reference_points,
                                               input_flatten, spatial_shapes_static, cfg)
    jax.block_until_ready(out)

    ref_out, ref_loc, ref_attn = reference_forward(params, query, reference_points,
                                                   input_flatten, spatial_shapes_static, cfg)
    # tightened tolerances (previously 2e-2): all-f32 kernel path vs HIGHEST-precision ref
    assert np.allclose(np.asarray(loc), np.asarray(ref_loc), atol=2e-3, rtol=2e-3)
    assert np.allclose(np.asarray(attn), np.asarray(ref_attn), atol=2e-3, rtol=2e-3)
    assert np.allclose(np.asarray(out), np.asarray(ref_out), atol=5e-3, rtol=5e-3)
    print("KERNEL_OK")
</pallas_src>

<mosaic_0001>
module attributes {stable_mosaic.version = 11 : i64} {
  func.func @_value_proj_kernel(%arg0: i32, %arg1: i32, %arg2: memref<1x80x32xf32, #tpu.memory_space<vmem>>, %arg3: memref<32x32xf32, #tpu.memory_space<vmem>>, %arg4: memref<1x32xf32, #tpu.memory_space<vmem>>, %arg5: memref<1x80x32xf32, #tpu.memory_space<vmem>>) attributes {dimension_semantics = [#tpu.dimension_semantics<parallel>, #tpu.dimension_semantics<parallel>], iteration_bounds = array<i64: 2, 1>, scalar_prefetch = 0 : i64, scratch_operands = 0 : i64, tpu.core_type = #tpu.core_type<tc>, window_params = [{transform_indices = @transform_0, window_bounds = array<i64: 1, 80, 32>}, {pipeline_mode = #tpu.pipeline_mode<synchronous>, transform_indices = @transform_1, window_bounds = array<i64: 32, 32>}, {pipeline_mode = #tpu.pipeline_mode<synchronous>, transform_indices = @transform_2, window_bounds = array<i64: 1, 32>}, {transform_indices = @transform_3, window_bounds = array<i64: 1, 80, 32>}]} {
    %c0 = arith.constant 0 : index
    %c0_0 = arith.constant 0 : index
    %c0_1 = arith.constant 0 : index
    %0 = vector.load %arg2[%c0, %c0_0, %c0_1] : memref<1x80x32xf32, #tpu.memory_space<vmem>>, vector<1x80x32xf32>
    %1 = vector.shape_cast %0 : vector<1x80x32xf32> to vector<80x32xf32>
    %c0_2 = arith.constant 0 : index
    %c0_3 = arith.constant 0 : index
    %2 = vector.load %arg3[%c0_2, %c0_3] : memref<32x32xf32, #tpu.memory_space<vmem>>, vector<32x32xf32>
    %cst = arith.constant dense<0.000000e+00> : vector<80x32xf32>
    %3 = tpu.matmul %1, %2, %cst {dimension_numbers = #tpu.dot_dimension_numbers<[1], [0], [0], [1], [0, 0, 1, 1], [], []>} : vector<80x32xf32>, vector<32x32xf32>, vector<80x32xf32> -> vector<80x32xf32>
    %c0_4 = arith.constant 0 : index
    %c0_5 = arith.constant 0 : index
    %4 = vector.load %arg4[%c0_4, %c0_5] : memref<1x32xf32, #tpu.memory_space<vmem>>, vector<1x32xf32>
    %5 = vector.broadcast %4 : vector<1x32xf32> to vector<80x32xf32>
    %6 = arith.addf %3, %5 : vector<80x32xf32>
    %c0_6 = arith.constant 0 : index
    %c0_7 = arith.constant 0 : index
    %c0_8 = arith.constant 0 : index
    %7 = vector.load %arg5[%c0_6, %c0_7, %c0_8] : memref<1x80x32xf32, #tpu.memory_space<vmem>>, vector<1x80x32xf32>
    %8 = vector.shape_cast %7 : vector<1x80x32xf32> to vector<80x32xf32>
    %9 = vector.shape_cast %6 : vector<80x32xf32> to vector<1x80x32xf32>
    tpu.vector_store %arg5[%c0_6, %c0_7, %c0_8], %9 {strides = array<i32>} : memref<1x80x32xf32, #tpu.memory_space<vmem>>, vector<1x80x32xf32>,
    return
  }
  func.func @transform_0(%arg0: i32, %arg1: i32) -> (i32, i32, i32) {
    %c0_i32 = arith.constant 0 : i32
    %c0_i32_0 = arith.constant 0 : i32
    return %arg0, %arg1, %c0_i32 : i32, i32, i32
  }
  func.func @transform_1(%arg0: i32, %arg1: i32) -> (i32, i32) {
    %c0_i32 = arith.constant 0 : i32
    %c0_i32_0 = arith.constant 0 : i32
    %c0_i32_1 = arith.constant 0 : i32
    return %c0_i32, %c0_i32_0 : i32, i32
  }
  func.func @transform_2(%arg0: i32, %arg1: i32) -> (i32, i32) {
    %c0_i32 = arith.constant 0 : i32
    %c0_i32_0 = arith.constant 0 : i32
    %c0_i32_1 = arith.constant 0 : i32
    return %c0_i32, %c0_i32_0 : i32, i32
  }
  func.func @transform_3(%arg0: i32, %arg1: i32) -> (i32, i32, i32) {
    %c0_i32 = arith.constant 0 : i32
    %c0_i32_0 = arith.constant 0 : i32
    return %arg0, %arg1, %c0_i32 : i32, i32, i32
  }
}

</mosaic_0001>

<bundles_post_ra>
// kernel: tpu_custom_call.1
= control target key start
LH: loop header
LB: loop body
LE: loop exit
PB: predicated region body
PF: predicated region fallthrough
CT: control target
= control target key end

     0   :  { %s612_s12 = smov 0   ;;  %s614_s13 = smov 0   ;;  %s683_s0 = inlined_call_operand.vmem [shape: f32[2,80,32], index: 0, kind: input, shape index: {}]   ;;  %s684_s1 = inlined_call_operand.vmem [shape: f32[32,32], index: 1, kind: input, shape index: {}]   ;;  %s685_s2 = inlined_call_operand.vmem [shape: f32[1,32], index: 2, kind: input, shape index: {}]   ;;  %s686_s3 = inlined_call_operand.vmem [shape: f32[2,80,32], index: 3, kind: output, shape index: {}]  }
   0x1   :  { %s616_s14 = smov 0  }
   0x2 LB: > { %s25_s15 = sadd.s32 1, %s586_s13  ;;  %p478_p0 = scmp.ge.s32.totalorder %s590_s14, 1  ;;  %s590_s14 = sphi %s616_s14, %s13_s14   ;;  %s586_s13 = sphi %s614_s13, %s688_s13   ;;  %s582_s12 = sphi %s612_s12, %s687_s12  }
   0x3   : > { %p27_p1 = scmp.ge.s32.totalorder %s25_s15, 2  ;;  %p158_p2 = scmp.lt.s32.totalorder %s590_s14, 3 }
   0x5   : > { %s690_s15 = smov (%p27_p1, %s25_s15), 0  ;;  %p159_p3 = pnand %p478_p0, %p158_p2 }
   0x6   : > { %v220_v0 = vld [vmem:[%s684_s1] sm:$0xff] (!%p159_p3)  ;;  %v221_v1 = vld [vmem:[%s684_s1 + $0x8] sm:$0xff] (!%p159_p3)  ;;  %v222_v2 = vld [vmem:[%s684_s1 + $0x10] sm:$0xff] (!%p159_p3)  ;;  %p191_p4 = scmp.lt.s32.totalorder (!%p159_p3), %s582_s12, 1  ;;  %vm231_vm0 = vcmask (!%p159_p3), 261120  }
   0x7   : > { %162 = sbr.rel (%p159_p3) target bundleno = 244 (0xf4), region = 32  ;;  %v531_v3 = vpack.c.bf16 (!%p159_p3), %v221_v1, %v220_v0  ;;  %v223_v4 = vld [vmem:[%s684_s1 + $0x18] sm:$0xff] (!%p159_p3)  ;;  %v481_v16 = vld [vmem:[%s685_s2] ss:$0 sm:$0xff] (!%p159_p3) }
   0x8   : > { %v535_v5 = vpack.c.bf16 (!%p159_p3), %v223_v4, %v222_v2 }
   0x9   : > { %532 = vmatprep.subr.bf16.mxu0 (!%p159_p3), %v531_v3  ;;  %539 = vmatprep.subr.bf16.mxu1 (!%p159_p3), %v531_v3 }
   0xa   : > { %534 = vmatpush3.bf16.msra.mxu0 (!%p159_p3), %v531_v3  ;;  %541 = vmatpush3.bf16.msra.mxu1 (!%p159_p3), %v531_v3 }
   0xb   : > { %536 = vmatprep.subr.bf16.mxu0 (!%p159_p3), %v535_v5  ;;  %540 = vmatprep.subr.bf16.mxu1 (!%p159_p3), %v535_v5 }
   0xe   : > { %s692_s12 = smov (!%p191_p4, %s582_s12), 1  ;;  %538 = vmatpush3.bf16.msra.mxu0 %v535_v5  ;;  %542 = vmatpush3.bf16.msra.mxu1 %v535_v5 }
   0xf   : > { %s543_s24 = smul.u32 80, %s692_s12 }
  0x11   : > { %s198_s27 = scalar_lea.vmem %s683_s0, %s543_s24  ;;  %s208_s5 = scalar_lea.vmem %s686_s3, %s543_s24 }
  0x12   : > { %v210_v6 = vld [vmem:[%s198_s27] sm:$0xff]  ;;  %v216_v7 = vld [vmem:[%s198_s27 + $0x30] sm:$0xff]  ;;  %v211_v8 = vld [vmem:[%s198_s27 + $0x8] sm:$0xff] }
  0x13   : > { %516 = vmatprep.mubr.msk.f32.mxu0 %vm231_vm0, %v210_v6  ;;  %525 = vmatprep.mubr.msk.f32.mxu1 %vm231_vm0, %v216_v7  ;;  %v212_v9 = vld [vmem:[%s198_s27 + $0x10] sm:$0xff]  ;;  %v217_v10 = vld [vmem:[%s198_s27 + $0x38] sm:$0xff]  ;;  %v218_v11 = vld [vmem:[%s198_s27 + $0x40] sm:$0xff] }
  0x14   : > { %517 = vmatmul.mubr.msk.f32.vlgmr.msra.gmra.mrb[0].mxu0 %vm231_vm0, %v211_v8  ;;  %526 = vmatmul.mubr.msk.f32.vlgmr.msra.gmra.mrb[0].mxu1 %vm231_vm0, %v217_v10  ;;  %v213_v12 = vld [vmem:[%s198_s27 + $0x18] sm:$0xff]  ;;  %v214_v13 = vld [vmem:[%s198_s27 + $0x20] sm:$0xff]  ;;  %v219_v14 = vld [vmem:[%s198_s27 + $0x48] sm:$0xff] }
  0x15   : > { %519 = vmatprep.mubr.msk.f32.mxu0 %vm231_vm0, %v212_v9  ;;  %528 = vmatprep.mubr.msk.f32.mxu1 %vm231_vm0, %v218_v11  ;;  %v215_v15 = vld [vmem:[%s198_s27 + $0x28] sm:$0xff] }
  0x18   : > { %520 = vmatmul.mubr.msk.f32.gmra.mrb[2].mxu0 %vm231_vm0, %v213_v12  ;;  %529 = vmatmul.mubr.msk.f32.gmra.mrb[2].mxu1 %vm231_vm0, %v219_v14 }
  0x19   : > { %522 = vmatprep.mubr.msk.f32.mxu0 %vm231_vm0, %v214_v13 }
  0x1c   : > { %523 = vmatmul.mubr.msk.f32.gmra.mrb[4].mxu0 %vm231_vm0, %v215_v15 }
  0xe7   : > { %v518_v17 = vpop.f32.mrb[0].mxu0  ;;  %v527_v20 = vpop.f32.mrb[0].mxu1 }
  0xe8   : > { %v334_v18 = vadd.f32 %v518_v17, %v481_v16  ;;  %v328_v19 = vpop.f32.mrb[1].mxu0  ;;  %v364_v22 = vadd.f32 %v527_v20, %v481_v16  ;;  %v358_v23 = vpop.f32.mrb[1].mxu1 }
  0xe9   : > { %v329_v21 = vadd.f32 %v481_v16, %v328_v19  ;;  %v359_v24 = vadd.f32 %v481_v16, %v358_v23 }
  0xea   : > { %378 = vst.msk [vmem:[%s208_s5 + $0x8] sm:$0xff] %vm231_vm0, %v334_v18  ;;  %384 = vst.msk [vmem:[%s208_s5 + $0x38] sm:$0xff] %vm231_vm0, %v364_v22 }
  0xeb   : > { %377 = vst.msk [vmem:[%s208_s5] sm:$0xff] %vm231_vm0, %v329_v21  ;;  %v521_v25 = vpop.f32.mrb[2].mxu0  ;;  %383 = vst.msk [vmem:[%s208_s5 + $0x30] sm:$0xff] %vm231_vm0, %v359_v24  ;;  %v530_v28 = vpop.f32.mrb[2].mxu1 }
  0xec   : > { %v344_v26 = vadd.f32 %v521_v25, %v481_v16  ;;  %v338_v27 = vpop.f32.mrb[3].mxu0  ;;  %v374_v30 = vadd.f32 %v530_v28, %v481_v16  ;;  %v368_v31 = vpop.f32.mrb[3].mxu1 }
  0xed   : > { %v339_v29 = vadd.f32 %v481_v16, %v338_v27  ;;  %v369_v32 = vadd.f32 %v481_v16, %v368_v31 }
  0xee   : > { %380 = vst.msk [vmem:[%s208_s5 + $0x18] sm:$0xff] %vm231_vm0, %v344_v26  ;;  %386 = vst.msk [vmem:[%s208_s5 + $0x48] sm:$0xff] %vm231_vm0, %v374_v30 }
  0xef   : > { %379 = vst.msk [vmem:[%s208_s5 + $0x10] sm:$0xff] %vm231_vm0, %v339_v29  ;;  %v524_v33 = vpop.f32.mrb[4].mxu0  ;;  %385 = vst.msk [vmem:[%s208_s5 + $0x40] sm:$0xff] %vm231_vm0, %v369_v32 }
  0xf0   : > { %v354_v34 = vadd.f32 %v524_v33, %v481_v16  ;;  %v348_v35 = vpop.f32.mrb[5].mxu0 }
  0xf1   : > { %v349_v36 = vadd.f32 %v481_v16, %v348_v35 }
  0xf2   : > { %382 = vst.msk [vmem:[%s208_s5 + $0x28] sm:$0xff] %vm231_vm0, %v354_v34 }
  0xf3   : > { %381 = vst.msk [vmem:[%s208_s5 + $0x20] sm:$0xff] %vm231_vm0, %v349_v36 }
  0xf4 PF: > { %s13_s14 = sadd.s32 1, %s590_s14   ;;  %s687_s12 = smov %s586_s13 }
  0xf5   : > { %p10_p5 = scmp.ge.s32.totalorder %s13_s14, 4   ;;  %s688_s13 = smov %s690_s15 }
  0xf7   :  { %12 = sbr.rel (!%p10_p5) target bundleno = 2 (0x2), region = 62 }

</bundles_post_ra>
